<compile_context>
chip_gen: v7x
topology: tpu7x:2x2x1
jax: 0.10.0
libtpu: 0.0.40
codegen_flags: <defaults>
</compile_context>

<pallas_src>
import functools

import jax
import jax.numpy as jnp
from jax import lax
from jax.experimental import pallas as pl
from jax.experimental.pallas import tpu as pltpu


def _bench_loop_kernel(x_ref, w_ref, b_ref, o_ref, *,
                       num_repeats: int, matmul_dtype, pack: bool):
    """Runs operator(x) = relu(x @ W + b) `num_repeats` times, feeding the
    output back as the next input; writes the last iterate.

    x_ref: (TN, H)                node-feature tile
    w_ref: (H, H) or (2H, 2H)     weight (block_diag(W, W) when pack=True)
    b_ref: (1, H) or (1, 2H)      bias row
    o_ref: (TN, H)                last loop iterate
    """
    tile_n, h = x_ref.shape

    # Cast W once for the MXU; bias stays a single f32 row (Mosaic replicates
    # it per-vreg in the add — no full-tile materialization).
    w = w_ref[...].astype(matmul_dtype)
    b_row = b_ref[...].astype(jnp.float32)

    x0 = x_ref[...]
    if pack:
        # Pack two M-halves along lanes: (TN, H) -> (TN//2, 2H).  Concat at a
        # 128-lane boundary so no relayout copies are needed.
        half = tile_n // 2
        x0 = jnp.concatenate([x0[:half, :], x0[half:, :]], axis=-1)

    xc = x0.astype(matmul_dtype)

    def body(_, carry):
        y = jnp.dot(carry, w, preferred_element_type=jnp.float32)
        # bf16 carry between iterations: the value entering the next matmul is
        # identical to casting an f32 carry to bf16 right before the dot.
        return jnp.maximum(y + b_row, 0.0).astype(matmul_dtype)

    if num_repeats > 1:
        unroll = True if num_repeats <= 8 else 4
        xc = lax.fori_loop(0, num_repeats - 1, body, xc, unroll=unroll)

    # Final iteration kept in f32 for the output.
    y = jnp.dot(xc, w, preferred_element_type=jnp.float32)
    out = jnp.maximum(y + b_row, 0.0)

    if pack:
        # Unpack: (TN//2, 2H) -> (TN, H); both slices sit at 128-lane
        # boundaries, concat along sublanes.
        out = jnp.concatenate([out[:, :h], out[:, h:]], axis=0)

    o_ref[...] = out.astype(o_ref.dtype)


def _tpu_generation() -> int:
    """Best-effort TPU generation (5/6/7), 0 if unknown."""
    try:
        kind = jax.devices()[0].device_kind.lower()
    except Exception:  # pragma: no cover - defensive
        return 0
    for g in (7, 6, 5, 4):
        if f"v{g}" in kind:
            return g
    return 0


def _pick_tile_n(n: int, gen: int) -> int:
    """Generation-aware N-tile choice.

    v5e/v6e (1 TensorCore): largest legal tile (fewer grid steps, longer M
    stream through the MXU).  v7x (2 TensorCores): keep >= 2 grid steps and
    prefer an even step count so "parallel" splits evenly across cores.
    Cap 2048 keeps in/out double-buffers + scratch far below every chip's
    default scoped-VMEM limit.
    """
    if n % 8 != 0:
        return n  # block == full dim is always a legal block shape
    cap = min(2048, n)

    def largest_divisor(upper):
        best, t = 8, 8
        while t <= upper:
            if n % t == 0:
                best = t
            t += 8
        return best

    if gen >= 7 and n >= 16:
        # Prefer an even number of grid steps for the two TensorCores.
        best_even, t = None, 8
        upper = min(cap, n // 2)
        while t <= upper:
            if n % t == 0 and (n // t) % 2 == 0:
                best_even = t
            t += 8
        if best_even is not None:
            return best_even
        return largest_divisor(upper)

    return largest_divisor(cap)


def bench_model_forward(x, w, b, *, num_repeats: int, tile_n: int = None,
                        matmul_dtype=jnp.bfloat16):
    """Pallas equivalent of BenchModel.forward() for the dense operator."""
    n, h = x.shape
    assert w.shape == (h, h) and b.shape == (1, h)
    assert num_repeats >= 1

    gen = _tpu_generation()
    if tile_n is None:
        tile_n = _pick_tile_n(n, gen)
    assert n % tile_n == 0, "num_nodes must be a multiple of tile_n"

    # Block-diagonal MXU packing: only worthwhile on 256x256-MXU chips
    # (v6e / v7x) and only when H == 128 (otherwise the array is already
    # filled or H doesn't tile the trick cleanly).  Requires tile_n % 16 == 0
    # so the sublane split stays (8,)-aligned.
    pack = (gen >= 6) and (h == 128) and (tile_n % 16 == 0)

    wk, bk = w, b
    if pack:
        w2 = jnp.zeros((2 * h, 2 * h), dtype=w.dtype)
        wk = w2.at[:h, :h].set(w).at[h:, h:].set(w)   # block_diag(W, W)
        bk = jnp.concatenate([b, b], axis=-1)         # (1, 2H)
    hw = wk.shape[0]

    kernel = functools.partial(_bench_loop_kernel,
                               num_repeats=num_repeats,
                               matmul_dtype=matmul_dtype,
                               pack=pack)

    return pl.pallas_call(
        kernel,
        out_shape=jax.ShapeDtypeStruct((n, h), x.dtype),
        grid_spec=pltpu.PrefetchScalarGridSpec(
            num_scalar_prefetch=0,
            grid=(n // tile_n,),
            in_specs=[
                pl.BlockSpec((tile_n, h), lambda i: (i, 0)),  # x tile
                pl.BlockSpec((hw, hw), lambda i: (0, 0)),     # W (resident)
                pl.BlockSpec((1, hw), lambda i: (0, 0)),      # b (resident)
            ],
            out_specs=pl.BlockSpec((tile_n, h), lambda i: (i, 0)),
        ),
        compiler_params=pltpu.CompilerParams(
            dimension_semantics=("parallel",),
        ),
    )(x, wk, bk)


def _reference_mixed(x, w, b, num_repeats, matmul_dtype=jnp.bfloat16):
    """Pure-JAX reference mirroring the kernel's mixed precision:
    bf16 matmul operands, f32 accumulation / bias add / relu."""
    wl = w.astype(matmul_dtype)
    bf = b.astype(jnp.float32)
    y = x.astype(jnp.float32)
    for _ in range(num_repeats):
        y = jnp.maximum(
            jnp.dot(y.astype(matmul_dtype), wl,
                    preferred_element_type=jnp.float32) + bf,
            0.0)
    return y.astype(x.dtype)


if __name__ == "__main__":
    num_nodes = 256   # N
    hidden = 128      # H
    num_repeats = 4

    key = jax.random.PRNGKey(0)
    kx, kw, kb = jax.random.split(key, 3)

    x = jax.random.normal(kx, (num_nodes, hidden), dtype=jnp.float32)
    # Small-magnitude weights so repeated application stays well-conditioned.
    w = (jax.random.normal(kw, (hidden, hidden), dtype=jnp.float32)
         * (0.5 / jnp.sqrt(hidden)))
    b = jax.random.normal(kb, (1, hidden), dtype=jnp.float32) * 0.1

    out = bench_model_forward(x, w, b, num_repeats=num_repeats)
    out = jax.block_until_ready(out)

    ref = _reference_mixed(x, w, b, num_repeats)
    assert out.shape == (num_nodes, hidden)
    assert jnp.allclose(out, ref, atol=1e-2, rtol=1e-2)

    print("KERNEL_OK")
</pallas_src>

<mosaic_0001>
module attributes {stable_mosaic.version = 11 : i64} {
  func.func @_bench_loop_kernel(%arg0: i32, %arg1: memref<256x128xf32, #tpu.memory_space<vmem>>, %arg2: memref<128x128xf32, #tpu.memory_space<vmem>>, %arg3: memref<1x128xf32, #tpu.memory_space<vmem>>, %arg4: memref<256x128xf32, #tpu.memory_space<vmem>>) attributes {dimension_semantics = [#tpu.dimension_semantics<parallel>], iteration_bounds = array<i64: 1>, scalar_prefetch = 0 : i64, scratch_operands = 0 : i64, tpu.core_type = #tpu.core_type<tc>, window_params = [{transform_indices = @transform_0, window_bounds = array<i64: 256, 128>}, {pipeline_mode = #tpu.pipeline_mode<synchronous>, transform_indices = @transform_1, window_bounds = array<i64: 128, 128>}, {pipeline_mode = #tpu.pipeline_mode<synchronous>, transform_indices = @transform_2, window_bounds = array<i64: 1, 128>}, {transform_indices = @transform_3, window_bounds = array<i64: 256, 128>}]} {
    %c0 = arith.constant 0 : index
    %c0_0 = arith.constant 0 : index
    %0 = vector.load %arg2[%c0, %c0_0] : memref<128x128xf32, #tpu.memory_space<vmem>>, vector<128x128xf32>
    %1 = arith.truncf %0 : vector<128x128xf32> to vector<128x128xbf16>
    %c0_1 = arith.constant 0 : index
    %c0_2 = arith.constant 0 : index
    %2 = vector.load %arg3[%c0_1, %c0_2] : memref<1x128xf32, #tpu.memory_space<vmem>>, vector<1x128xf32>
    %c0_3 = arith.constant 0 : index
    %c0_4 = arith.constant 0 : index
    %3 = vector.load %arg1[%c0_3, %c0_4] : memref<256x128xf32, #tpu.memory_space<vmem>>, vector<256x128xf32>
    %4 = arith.truncf %3 : vector<256x128xf32> to vector<256x128xbf16>
    %c0_i32 = arith.constant 0 : i32
    %cst = arith.constant dense<0.000000e+00> : vector<256x128xf32>
    %5 = tpu.matmul %4, %1, %cst {dimension_numbers = #tpu.dot_dimension_numbers<[1], [0], [0], [1], [0, 0, 1, 1], [], []>} : vector<256x128xbf16>, vector<128x128xbf16>, vector<256x128xf32> -> vector<256x128xf32>
    %6 = vector.broadcast %2 : vector<1x128xf32> to vector<256x128xf32>
    %7 = arith.addf %5, %6 : vector<256x128xf32>
    %cst_5 = arith.constant 0.000000e+00 : f32
    %8 = vector.broadcast %cst_5 : f32 to vector<256x128xf32>
    %9 = arith.maximumf %7, %8 : vector<256x128xf32>
    %10 = arith.truncf %9 : vector<256x128xf32> to vector<256x128xbf16>
    %c1_i32 = arith.constant 1 : i32
    %cst_6 = arith.constant dense<0.000000e+00> : vector<256x128xf32>
    %11 = tpu.matmul %10, %1, %cst_6 {dimension_numbers = #tpu.dot_dimension_numbers<[1], [0], [0], [1], [0, 0, 1, 1], [], []>} : vector<256x128xbf16>, vector<128x128xbf16>, vector<256x128xf32> -> vector<256x128xf32>
    %12 = vector.broadcast %2 : vector<1x128xf32> to vector<256x128xf32>
    %13 = arith.addf %11, %12 : vector<256x128xf32>
    %cst_7 = arith.constant 0.000000e+00 : f32
    %14 = vector.broadcast %cst_7 : f32 to vector<256x128xf32>
    %15 = arith.maximumf %13, %14 : vector<256x128xf32>
    %16 = arith.truncf %15 : vector<256x128xf32> to vector<256x128xbf16>
    %c2_i32 = arith.constant 2 : i32
    %cst_8 = arith.constant dense<0.000000e+00> : vector<256x128xf32>
    %17 = tpu.matmul %16, %1, %cst_8 {dimension_numbers = #tpu.dot_dimension_numbers<[1], [0], [0], [1], [0, 0, 1, 1], [], []>} : vector<256x128xbf16>, vector<128x128xbf16>, vector<256x128xf32> -> vector<256x128xf32>
    %18 = vector.broadcast %2 : vector<1x128xf32> to vector<256x128xf32>
    %19 = arith.addf %17, %18 : vector<256x128xf32>
    %cst_9 = arith.constant 0.000000e+00 : f32
    %20 = vector.broadcast %cst_9 : f32 to vector<256x128xf32>
    %21 = arith.maximumf %19, %20 : vector<256x128xf32>
    %22 = arith.truncf %21 : vector<256x128xf32> to vector<256x128xbf16>
    %cst_10 = arith.constant dense<0.000000e+00> : vector<256x128xf32>
    %23 = tpu.matmul %22, %1, %cst_10 {dimension_numbers = #tpu.dot_dimension_numbers<[1], [0], [0], [1], [0, 0, 1, 1], [], []>} : vector<256x128xbf16>, vector<128x128xbf16>, vector<256x128xf32> -> vector<256x128xf32>
    %24 = vector.broadcast %2 : vector<1x128xf32> to vector<256x128xf32>
    %25 = arith.addf %23, %24 : vector<256x128xf32>
    %cst_11 = arith.constant 0.000000e+00 : f32
    %26 = vector.broadcast %cst_11 : f32 to vector<256x128xf32>
    %27 = arith.maximumf %25, %26 : vector<256x128xf32>
    %c0_12 = arith.constant 0 : index
    %c0_13 = arith.constant 0 : index
    %28 = vector.load %arg4[%c0_12, %c0_13] : memref<256x128xf32, #tpu.memory_space<vmem>>, vector<256x128xf32>
    tpu.vector_store %arg4[%c0_12, %c0_13], %27 {strides = array<i32>} : memref<256x128xf32, #tpu.memory_space<vmem>>, vector<256x128xf32>,
    return
  }
  func.func @transform_0(%arg0: i32) -> (i32, i32) {
    %c0_i32 = arith.constant 0 : i32
    %c0_i32_0 = arith.constant 0 : i32
    return %arg0, %c0_i32 : i32, i32
  }
  func.func @transform_1(%arg0: i32) -> (i32, i32) {
    %c0_i32 = arith.constant 0 : i32
    %c0_i32_0 = arith.constant 0 : i32
    %c0_i32_1 = arith.constant 0 : i32
    return %c0_i32, %c0_i32_0 : i32, i32
  }
  func.func @transform_2(%arg0: i32) -> (i32, i32) {
    %c0_i32 = arith.constant 0 : i32
    %c0_i32_0 = arith.constant 0 : i32
    %c0_i32_1 = arith.constant 0 : i32
    return %c0_i32, %c0_i32_0 : i32, i32
  }
  func.func @transform_3(%arg0: i32) -> (i32, i32) {
    %c0_i32 = arith.constant 0 : i32
    %c0_i32_0 = arith.constant 0 : i32
    return %arg0, %c0_i32 : i32, i32
  }
}

</mosaic_0001>

<bundles_post_ra>
// kernel: tpu_custom_call.1
= control target key start
LH: loop header
LB: loop body
LE: loop exit
PB: predicated region body
PF: predicated region fallthrough
CT: control target
= control target key end

     0   :  { %8 = vsyncpa [#allocation3], 0  ;;  %s1642_s0 = inlined_call_operand.hbm [shape: f32[256,128], index: 0, kind: input, shape index: {}]   ;;  %s1643_s1 = inlined_call_operand.hbm [shape: f32[128,128], index: 1, kind: input, shape index: {}]   ;;  %s1644_s2 = inlined_call_operand.vmem [shape: f32[1,128], index: 2, kind: input, shape index: {}]   ;;  %s1645_s3 = inlined_call_operand.hbm [shape: f32[256,128], index: 3, kind: output, shape index: {}]  }
   0x1   :  { %9 = vsyncpa [#allocation6], 0 }
   0x2   :  { %10 = vsyncpa [#allocation4], 0  ;;  %s1360_s12 = smov [#allocation2]   ;;  %s1288_s16 = scalar_lea.hbm %s1642_s0, 4096 }
   0x3   :  { %s16_s13 = sshll.u32 %s1360_s12, 4  ;;  %p1289_p0 = scmp.ne.s32.totalorder %s1642_s0, %s1288_s16  ;;  %s17_s13 = int_to_ptr.vmem [resolvable:$true] %s16_s13 }
   0x4   :  { %p1292_p1 = scmp.lt.u32.totalorder %s1288_s16, %s1642_s0 }
   0x6   :  { %p1294_p2 = pnand %p1292_p1, %p1289_p0 }
   0x8   :  { %1297 = shalt.err (!%p1294_p2)
}
   0x9   :  { %s1298_s21 = scalar_lea.vmem %s17_s13, 4096  ;;  %p1303_p4 = scmp.lt.s32.totalorder %s17_s13, %s17_s13 }
   0xa   :  { %p1299_p3 = scmp.ne.s32.totalorder %s17_s13, %s1298_s21  ;;  %p1304_p5 = scmp.lt.s32.totalorder %s1298_s21, %s1298_s21 }
   0xc   :  { %p1305_p6 = por %p1304_p5, %p1303_p4 }
   0xe   :  { %p1306_p7 = pnand %p1305_p6, %p1299_p3 }
  0x10   :  { %1309 = shalt.err (!%p1306_p7)
}
  0x11   :  { %s1361_s22 = smov 128   ;;  %s1362_s23 = smov 8  }
  0x12   :  { %22 = dma.hbm_to_vmem [thread:$0]  %s1642_s0, 4096, %s17_s13, [#allocation3], %s1361_s22, %s1361_s22, %s1362_s23  }
  0x13   :  { %s1363_s26 = smov [#allocation5]   ;;  %s1310_s30 = scalar_lea.hbm %s1643_s1, 2048 }
  0x14   :  { %s28_s27 = sshll.u32 %s1363_s26, 4  ;;  %p1311_p8 = scmp.ne.s32.totalorder %s1643_s1, %s1310_s30  ;;  %s29_s27 = int_to_ptr.vmem [resolvable:$true] %s28_s27 }
  0x15   :  { %p1314_p9 = scmp.lt.u32.totalorder %s1310_s30, %s1643_s1 }
  0x17   :  { %p1316_p10 = pnand %p1314_p9, %p1311_p8 }
  0x19   :  { %1319 = shalt.err (!%p1316_p10)
}
  0x1a   :  { %s1320_s8 = scalar_lea.vmem %s29_s27, 2048  ;;  %p1325_p12 = scmp.lt.s32.totalorder %s29_s27, %s29_s27 }
  0x1b   :  { %p1321_p11 = scmp.ne.s32.totalorder %s29_s27, %s1320_s8  ;;  %p1326_p13 = scmp.lt.s32.totalorder %s1320_s8, %s1320_s8 }
  0x1d   :  { %p1327_p0 = por %p1326_p13, %p1325_p12 }
  0x1f   :  { %p1328_p1 = pnand %p1327_p0, %p1321_p11 }
  0x21   :  { %1331 = shalt.err (!%p1328_p1)
}
  0x22   :  { %34 = dma.hbm_to_vmem [thread:$0]  %s1643_s1, 2048, %s29_s27, [#allocation6], %s1361_s22, %s1361_s22, %s1362_s23  }
  0x23   :  { %1354 = dma.done.wait [#allocation3], 4096  }
  0x24   :  { %1355 = vsyncadd [#allocation3], 4294963200 }
  0x25   :  { %1356 = dma.done.wait [#allocation6], 2048  }
  0x26   :  { %1357 = vsyncadd [#allocation6], 4294965248  ;;  %v44_v0 = vld [vmem:[#allocation5] sm:$0xff]  ;;  %v45_v1 = vld [vmem:[#allocation5 + $0x8] sm:$0xff]  ;;  %s1364_s13 = smov [#allocation7]  }
  0x27   :  { %v46_v2 = vld [vmem:[#allocation5 + $0x10] sm:$0xff]  ;;  %v1415_v3 = vpack.c.bf16 %v45_v1, %v44_v0  ;;  %v47_v4 = vld [vmem:[#allocation5 + $0x18] sm:$0xff]  ;;  %v48_v6 = vld [vmem:[#allocation5 + $0x20] sm:$0xff]  ;;  %s980_s14 = sshll.u32 %s1364_s13, 4  ;;  %s981_s14 = int_to_ptr.vmem [resolvable:$true] %s980_s14 }
  0x28   :  { %v1417_v5 = vpack.c.bf16 %v47_v4, %v46_v2  ;;  %v49_v7 = vld [vmem:[#allocation5 + $0x28] sm:$0xff]  ;;  %v69_v9 = vld [vmem:[#allocation2] sm:$0xff]  ;;  %v50_v11 = vld [vmem:[#allocation5 + $0x30] sm:$0xff]  ;;  %s1332_s15 = scalar_lea.vmem %s981_s14, 4096  ;;  %p1337_p3 = scmp.lt.s32.totalorder %s981_s14, %s981_s14 }
  0x29   :  { %1090 = vmatprep.subr.bf16.mxu0 %v1415_v3  ;;  %1138 = vmatprep.subr.bf16.mxu1 %v1415_v3  ;;  %v1424_v8 = vpack.c.bf16 %v49_v7, %v48_v6  ;;  %v70_v10 = vld [vmem:[#allocation2 + $0x8] sm:$0xff]  ;;  %v51_v12 = vld [vmem:[#allocation5 + $0x38] sm:$0xff]  ;;  %v52_v15 = vld [vmem:[#allocation5 + $0x40] sm:$0xff]  ;;  %p1333_p2 = scmp.ne.s32.totalorder %s981_s14, %s1332_s15  ;;  %p1338_p4 = scmp.lt.s32.totalorder %s1332_s15, %s1332_s15 }
  0x2a   :  { %1091 = vmatpush3.bf16.msra.mxu0 %v1415_v3  ;;  %1139 = vmatpush3.bf16.msra.mxu1 %v1415_v3  ;;  %v101_v13 = vpack.c.bf16 %v70_v10, %v69_v9  ;;  %v1429_v14 = vpack.c.bf16 %v51_v12, %v50_v11  ;;  %v53_v16 = vld [vmem:[#allocation5 + $0x48] sm:$0xff]  ;;  %v54_v18 = vld [vmem:[#allocation5 + $0x50] sm:$0xff]  ;;  %v55_v19 = vld [vmem:[#allocation5 + $0x58] sm:$0xff] }
  0x2b   :  { %1092 = vmatprep.subr.bf16.mxu0 %v1417_v5  ;;  %1140 = vmatprep.subr.bf16.mxu1 %v1417_v5  ;;  %v1435_v17 = vpack.c.bf16 %v53_v16, %v52_v15  ;;  %v1441_v20 = vpack.c.bf16 %v55_v19, %v54_v18  ;;  %v56_v21 = vld [vmem:[#allocation5 + $0x60] sm:$0xff]  ;;  %v57_v22 = vld [vmem:[#allocation5 + $0x68] sm:$0xff]  ;;  %v58_v24 = vld [vmem:[#allocation5 + $0x70] sm:$0xff]  ;;  %p1339_p5 = por %p1338_p4, %p1337_p3 }
  0x2c   :  { %1106 = vmatprep.mubr.bf16.mxu0 %v101_v13  ;;  %v1447_v23 = vpack.c.bf16 %v57_v22, %v56_v21  ;;  %v59_v25 = vld [vmem:[#allocation5 + $0x78] sm:$0xff]  ;;  %v71_v27 = vld [vmem:[#allocation2 + $0x10] sm:$0xff]  ;;  %v73_v29 = vld [vmem:[#allocation2 + $0x20] sm:$0xff] }
  0x2d   :  { %v1453_v26 = vpack.c.bf16 %v59_v25, %v58_v24  ;;  %v72_v28 = vld [vmem:[#allocation2 + $0x18] sm:$0xff]  ;;  %v74_v30 = vld [vmem:[#allocation2 + $0x28] sm:$0xff]  ;;  %v75_v33 = vld [vmem:[#allocation2 + $0x30] sm:$0xff]  ;;  %p1340_p6 = pnand %p1339_p5, %p1333_p2 }
  0x2e   :  { %1093 = vmatpush3.bf16.msra.mxu0 %v1417_v5  ;;  %1141 = vmatpush3.bf16.msra.mxu1 %v1417_v5  ;;  %v102_v31 = vpack.c.bf16 %v72_v28, %v71_v27  ;;  %v103_v32 = vpack.c.bf16 %v74_v30, %v73_v29  ;;  %v76_v34 = vld [vmem:[#allocation2 + $0x38] sm:$0xff]  ;;  %v77_v35 = vld [vmem:[#allocation2 + $0x40] sm:$0xff]  ;;  %v78_v36 = vld [vmem:[#allocation2 + $0x48] sm:$0xff] }
  0x2f   :  { %1094 = vmatprep.subr.bf16.mxu0 %v1424_v8  ;;  %1142 = vmatprep.subr.bf16.mxu1 %v1424_v8  ;;  %v104_v37 = vpack.c.bf16 %v76_v34, %v75_v33  ;;  %v105_v38 = vpack.c.bf16 %v78_v36, %v77_v35  ;;  %v79_v39 = vld [vmem:[#allocation2 + $0x50] sm:$0xff]  ;;  %v80_v40 = vld [vmem:[#allocation2 + $0x58] sm:$0xff]  ;;  %v81_v41 = vld [vmem:[#allocation2 + $0x60] sm:$0xff] }
  0x30   :  { %v82_v42 = vld [vmem:[#allocation2 + $0x68] sm:$0xff]  ;;  %v106_v43 = vpack.c.bf16 %v80_v40, %v79_v39  ;;  %v83_v45 = vld [vmem:[#allocation2 + $0x70] sm:$0xff]  ;;  %v84_v46 = vld [vmem:[#allocation2 + $0x78] sm:$0xff] }
  0x31   :  { %v107_v44 = vpack.c.bf16 %v82_v42, %v81_v41  ;;  %v85_v47 = vld [vmem:[#allocation2 + $0x80] sm:$0xff]  ;;  %v86_v48 = vld [vmem:[#allocation2 + $0x88] sm:$0xff]  ;;  %v108_v49 = vpack.c.bf16 %v84_v46, %v83_v45  ;;  %v87_v51 = vld [vmem:[#allocation2 + $0x90] sm:$0xff] }
  0x32   :  { %1095 = vmatpush3.bf16.msra.mxu0 %v1424_v8  ;;  %1143 = vmatpush3.bf16.msra.mxu1 %v1424_v8  ;;  %v109_v50 = vpack.c.bf16 %v86_v48, %v85_v47  ;;  %v88_v52 = vld [vmem:[#allocation2 + $0x98] sm:$0xff]  ;;  %v89_v53 = vld [vmem:[#allocation2 + $0xa0] sm:$0xff]  ;;  %v90_v54 = vld [vmem:[#allocation2 + $0xa8] sm:$0xff] }
  0x33   :  { %1096 = vmatprep.subr.bf16.mxu0 %v1429_v14  ;;  %1144 = vmatprep.subr.bf16.mxu1 %v1429_v14  ;;  %v110_v55 = vpack.c.bf16 %v88_v52, %v87_v51  ;;  %v111_v56 = vpack.c.bf16 %v90_v54, %v89_v53  ;;  %v91_v57 = vld [vmem:[#allocation2 + $0xb0] sm:$0xff]  ;;  %v92_v58 = vld [vmem:[#allocation2 + $0xb8] sm:$0xff]  ;;  %v93_v59 = vld [vmem:[#allocation2 + $0xc0] sm:$0xff] }
  0x34   :  { %v94_v60 = vld [vmem:[#allocation2 + $0xc8] sm:$0xff]  ;;  %v112_v61 = vpack.c.bf16 %v92_v58, %v91_v57  ;;  %v95_v63 = vld [vmem:[#allocation2 + $0xd0] sm:$0xff]  ;;  %v96_v0 = vld [vmem:[#allocation2 + $0xd8] sm:$0xff] }
  0x35   :  { %v113_v62 = vpack.c.bf16 %v94_v60, %v93_v59  ;;  %v97_v1 = vld [vmem:[#allocation2 + $0xe0] sm:$0xff]  ;;  %v98_v2 = vld [vmem:[#allocation2 + $0xe8] sm:$0xff]  ;;  %v114_v4 = vpack.c.bf16 %v96_v0, %v95_v63  ;;  %v99_v7 = vld [vmem:[#allocation2 + $0xf0] sm:$0xff] }
  0x36   :  { %1097 = vmatpush3.bf16.msra.mxu0 %v1429_v14  ;;  %1145 = vmatpush3.bf16.msra.mxu1 %v1429_v14  ;;  %v115_v6 = vpack.c.bf16 %v98_v2, %v97_v1  ;;  %v100_v9 = vld [vmem:[#allocation2 + $0xf8] sm:$0xff]  ;;  %v1483_v11 = vld [vmem:[%s1644_s2] ss:$0 sm:$0xff] }
  0x37   :  { %1098 = vmatprep.subr.bf16.mxu0 %v1435_v17  ;;  %1146 = vmatprep.subr.bf16.mxu1 %v1435_v17  ;;  %v116_v10 = vpack.c.bf16 %v100_v9, %v99_v7 }
  0x3a   :  { %1099 = vmatpush3.bf16.msra.mxu0 %v1435_v17  ;;  %1147 = vmatpush3.bf16.msra.mxu1 %v1435_v17 }
  0x3b   :  { %1100 = vmatprep.subr.bf16.mxu0 %v1441_v20  ;;  %1148 = vmatprep.subr.bf16.mxu1 %v1441_v20 }
  0x3e   :  { %1101 = vmatpush3.bf16.msra.mxu0 %v1441_v20  ;;  %1149 = vmatpush3.bf16.msra.mxu1 %v1441_v20 }
  0x3f   :  { %1102 = vmatprep.subr.bf16.mxu0 %v1447_v23  ;;  %1150 = vmatprep.subr.bf16.mxu1 %v1447_v23 }
  0x42   :  { %1103 = vmatpush3.bf16.msra.mxu0 %v1447_v23  ;;  %1151 = vmatpush3.bf16.msra.mxu1 %v1447_v23 }
  0x43   :  { %1104 = vmatprep.subr.bf16.mxu0 %v1453_v26  ;;  %1152 = vmatprep.subr.bf16.mxu1 %v1453_v26 }
  0x46   :  { %1105 = vmatpush3.bf16.msra.mxu0 %v1453_v26  ;;  %1153 = vmatpush3.bf16.msra.mxu1 %v1453_v26 }
  0x47   :  { %1186 = vmatprep.subr.bf16.mxu0 %v1415_v3  ;;  %1234 = vmatprep.subr.bf16.mxu1 %v1415_v3 }
  0x49   :  { %1107 = vmatmul.mubr.bf16.vlgmr.msra.gmra.mrb[0].mxu0 %v102_v31 }
  0x4a   :  { %1110 = vmatprep.mubr.bf16.mxu0 %v103_v32  ;;  %1187 = vmatpush3.bf16.msra.mxu0 %v1415_v3 }
  0x4b   :  { %1188 = vmatprep.subr.bf16.mxu0 %v1417_v5 }
  0x4e   :  { %1189 = vmatpush3.bf16.msra.mxu0 %v1417_v5 }
  0x4f   :  { %1190 = vmatprep.subr.bf16.mxu0 %v1424_v8 }
  0x51   :  { %1111 = vmatmul.mubr.bf16.gmra.mrb[4].mxu0 %v104_v37 }
  0x52   :  { %1114 = vmatprep.mubr.bf16.mxu0 %v105_v38  ;;  %1191 = vmatpush3.bf16.msra.mxu0 %v1424_v8 }
  0x53   :  { %1192 = vmatprep.subr.bf16.mxu0 %v1429_v14 }
  0x56   :  { %1193 = vmatpush3.bf16.msra.mxu0 %v1429_v14 }
  0x57   :  { %1194 = vmatprep.subr.bf16.mxu0 %v1435_v17 }
  0x59   :  { %1115 = vmatmul.mubr.bf16.gmra.mrb[8].mxu0 %v106_v43 }
  0x5a   :  { %1118 = vmatprep.mubr.bf16.mxu0 %v107_v44  ;;  %1195 = vmatpush3.bf16.msra.mxu0 %v1435_v17 }
  0x5b   :  { %1196 = vmatprep.subr.bf16.mxu0 %v1441_v20 }
  0x5e   :  { %1197 = vmatpush3.bf16.msra.mxu0 %v1441_v20 }
  0x5f   :  { %1198 = vmatprep.subr.bf16.mxu0 %v1447_v23 }
  0x61   :  { %1119 = vmatmul.mubr.bf16.gmra.mrb[12].mxu0 %v108_v49 }
  0x62   :  { %1122 = vmatprep.mubr.bf16.mxu0 %v109_v50  ;;  %1199 = vmatpush3.bf16.msra.mxu0 %v1447_v23 }
  0x63   :  { %1200 = vmatprep.subr.bf16.mxu0 %v1453_v26 }
  0x66   :  { %1201 = vmatpush3.bf16.msra.mxu0 %v1453_v26 }
  0x69   :  { %1123 = vmatmul.mubr.bf16.gmra.mrb[16].mxu0 %v110_v55 }
  0x6a   :  { %1126 = vmatprep.mubr.bf16.mxu0 %v111_v56 }
  0x71   :  { %1127 = vmatmul.mubr.bf16.gmra.mrb[20].mxu0 %v112_v61 }
  0x72   :  { %1130 = vmatprep.mubr.bf16.mxu0 %v113_v62 }
  0x79   :  { %1131 = vmatmul.mubr.bf16.gmra.mrb[24].mxu0 %v114_v4 }
  0x7a   :  { %1134 = vmatprep.mubr.bf16.mxu0 %v115_v6 }
  0x81   :  { %1135 = vmatmul.mubr.bf16.gmra.mrb[28].mxu0 %v116_v10 }
 0x11c   :  { %v1108_v12 = vpop.f32.mrb[0].mxu0 }
 0x11d   :  { %v166_v13 = vadd.f32 %v1108_v12, %v1483_v11  ;;  %v157_v15 = vpop.f32.mrb[1].mxu0 }
 0x11e   :  { %v158_v16 = vadd.f32 %v1483_v11, %v157_v15  ;;  %v1109_v18 = vpop.f32.mrb[2].mxu0 }
 0x11f   :  { %v169_v19 = vadd.f32 %v1109_v18, %v1483_v11  ;;  %v160_v21 = vpop.f32.mrb[3].mxu0  ;;  %v286_v24 = vmax.f32 %v166_v13, 0.0 }
 0x120   :  { %v161_v22 = vadd.f32 %v1483_v11, %v160_v21  ;;  %v284_v27 = vmax.f32 %v158_v16, 0.0 }
 0x121   :  { %v287_v25 = vmax.f32 %v169_v19, 0.0 }
 0x122   :  { %v285_v28 = vmax.f32 %v161_v22, 0.0 }
 0x123   :  { %v317_v29 = vpack.c.bf16 %v287_v25, %v286_v24 }
 0x124   :  { %v1112_v30 = vpop.f32.mrb[4].mxu0  ;;  %v316_v31 = vpack.c.bf16 %v285_v28, %v284_v27 }
 0x125   :  { %v182_v32 = vadd.f32 %v1112_v30, %v1483_v11  ;;  %v173_v33 = vpop.f32.mrb[5].mxu0 }
 0x126   :  { %v174_v34 = vadd.f32 %v1483_v11, %v173_v33  ;;  %v1113_v35 = vpop.f32.mrb[6].mxu0  ;;  %1154 = vmatprep.mubr.bf16.mxu1 %v316_v31 }
 0x127   :  { %v185_v36 = vadd.f32 %v1113_v35, %v1483_v11  ;;  %v176_v37 = vpop.f32.mrb[7].mxu0  ;;  %1155 = vmatmul.mubr.bf16.vlgmr.msra.gmra.mrb[0].mxu1 %v317_v29  ;;  %v290_v39 = vmax.f32 %v182_v32, 0.0 }
 0x128   :  { %v177_v38 = vadd.f32 %v1483_v11, %v176_v37  ;;  %1235 = vmatpush3.bf16.msra.mxu1 %v1415_v3  ;;  %v288_v41 = vmax.f32 %v174_v34, 0.0 }
 0x129   :  { %v291_v40 = vmax.f32 %v185_v36, 0.0  ;;  %1236 = vmatprep.subr.bf16.mxu1 %v1417_v5 }
 0x12a   :  { %v289_v42 = vmax.f32 %v177_v38, 0.0 }
 0x12b   :  { %v319_v43 = vpack.c.bf16 %v291_v40, %v290_v39 }
 0x12c   :  { %v318_v44 = vpack.c.bf16 %v289_v42, %v288_v41  ;;  %v1116_v45 = vpop.f32.mrb[8].mxu0  ;;  %1237 = vmatpush3.bf16.msra.mxu1 %v1417_v5 }
 0x12d   :  { %v198_v46 = vadd.f32 %v1116_v45, %v1483_v11  ;;  %v189_v47 = vpop.f32.mrb[9].mxu0  ;;  %1238 = vmatprep.subr.bf16.mxu1 %v1424_v8 }
 0x12e   :  { %v190_v48 = vadd.f32 %v1483_v11, %v189_v47  ;;  %v1117_v49 = vpop.f32.mrb[10].mxu0  ;;  %1158 = vmatprep.mubr.bf16.mxu1 %v318_v44 }
 0x12f   :  { %v201_v3 = vadd.f32 %v1117_v49, %v1483_v11  ;;  %v192_v50 = vpop.f32.mrb[11].mxu0  ;;  %1159 = vmatmul.mubr.bf16.gmra.mrb[4].mxu1 %v319_v43  ;;  %v294_v52 = vmax.f32 %v198_v46, 0.0 }
 0x130   :  { %v193_v51 = vadd.f32 %v1483_v11, %v192_v50  ;;  %1239 = vmatpush3.bf16.msra.mxu1 %v1424_v8  ;;  %v292_v5 = vmax.f32 %v190_v48, 0.0 }
 0x131   :  { %v295_v53 = vmax.f32 %v201_v3, 0.0  ;;  %1240 = vmatprep.subr.bf16.mxu1 %v1429_v14 }
 0x132   :  { %v293_v54 = vmax.f32 %v193_v51, 0.0 }
 0x133   :  { %v321_v55 = vpack.c.bf16 %v295_v53, %v294_v52 }
 0x134   :  { %v320_v56 = vpack.c.bf16 %v293_v54, %v292_v5  ;;  %v1120_v57 = vpop.f32.mrb[12].mxu0  ;;  %1241 = vmatpush3.bf16.msra.mxu1 %v1429_v14 }
 0x135   :  { %v214_v58 = vadd.f32 %v1120_v57, %v1483_v11  ;;  %v205_v59 = vpop.f32.mrb[13].mxu0  ;;  %1242 = vmatprep.subr.bf16.mxu1 %v1435_v17 }
 0x136   :  { %v206_v60 = vadd.f32 %v1483_v11, %v205_v59  ;;  %v1121_v61 = vpop.f32.mrb[14].mxu0  ;;  %1162 = vmatprep.mubr.bf16.mxu1 %v320_v56 }
 0x137   :  { %v217_v8 = vadd.f32 %v1121_v61, %v1483_v11  ;;  %v208_v62 = vpop.f32.mrb[15].mxu0  ;;  %1163 = vmatmul.mubr.bf16.gmra.mrb[8].mxu1 %v321_v55  ;;  %v298_v0 = vmax.f32 %v214_v58, 0.0 }
 0x138   :  { %v209_v63 = vadd.f32 %v1483_v11, %v208_v62  ;;  %1243 = vmatpush3.bf16.msra.mxu1 %v1435_v17  ;;  %v296_v14 = vmax.f32 %v206_v60, 0.0 }
 0x139   :  { %v299_v1 = vmax.f32 %v217_v8, 0.0  ;;  %1244 = vmatprep.subr.bf16.mxu1 %v1441_v20 }
 0x13a   :  { %v297_v2 = vmax.f32 %v209_v63, 0.0 }
 0x13b   :  { %v323_v4 = vpack.c.bf16 %v299_v1, %v298_v0 }
 0x13c   :  { %v322_v6 = vpack.c.bf16 %v297_v2, %v296_v14  ;;  %v1124_v7 = vpop.f32.mrb[16].mxu0  ;;  %1245 = vmatpush3.bf16.msra.mxu1 %v1441_v20 }
 0x13d   :  { %v230_v9 = vadd.f32 %v1124_v7, %v1483_v11  ;;  %v221_v10 = vpop.f32.mrb[17].mxu0  ;;  %1246 = vmatprep.subr.bf16.mxu1 %v1447_v23 }
 0x13e   :  { %v222_v12 = vadd.f32 %v1483_v11, %v221_v10  ;;  %v1125_v13 = vpop.f32.mrb[18].mxu0  ;;  %1166 = vmatprep.mubr.bf16.mxu1 %v322_v6 }
 0x13f   :  { %v233_v17 = vadd.f32 %v1125_v13, %v1483_v11  ;;  %v224_v15 = vpop.f32.mrb[19].mxu0  ;;  %1167 = vmatmul.mubr.bf16.gmra.mrb[12].mxu1 %v323_v4  ;;  %v302_v18 = vmax.f32 %v230_v9, 0.0 }
 0x140   :  { %v225_v16 = vadd.f32 %v1483_v11, %v224_v15  ;;  %1247 = vmatpush3.bf16.msra.mxu1 %v1447_v23  ;;  %v300_v20 = vmax.f32 %v222_v12, 0.0 }
 0x141   :  { %v303_v19 = vmax.f32 %v233_v17, 0.0  ;;  %1248 = vmatprep.subr.bf16.mxu1 %v1453_v26 }
 0x142   :  { %v301_v21 = vmax.f32 %v225_v16, 0.0 }
 0x143   :  { %v325_v22 = vpack.c.bf16 %v303_v19, %v302_v18 }
 0x144   :  { %v324_v24 = vpack.c.bf16 %v301_v21, %v300_v20  ;;  %v1128_v25 = vpop.f32.mrb[20].mxu0  ;;  %1249 = vmatpush3.bf16.msra.mxu1 %v1453_v26 }
 0x145   :  { %v246_v27 = vadd.f32 %v1128_v25, %v1483_v11  ;;  %v237_v28 = vpop.f32.mrb[21].mxu0 }
 0x146   :  { %v238_v29 = vadd.f32 %v1483_v11, %v237_v28  ;;  %v1129_v30 = vpop.f32.mrb[22].mxu0  ;;  %1170 = vmatprep.mubr.bf16.mxu1 %v324_v24 }
 0x147   :  { %v249_v23 = vadd.f32 %v1129_v30, %v1483_v11  ;;  %v240_v31 = vpop.f32.mrb[23].mxu0  ;;  %1171 = vmatmul.mubr.bf16.gmra.mrb[16].mxu1 %v325_v22  ;;  %v306_v33 = vmax.f32 %v246_v27, 0.0 }
 0x148   :  { %v241_v32 = vadd.f32 %v1483_v11, %v240_v31  ;;  %v304_v35 = vmax.f32 %v238_v29, 0.0 }
 0x149   :  { %v307_v34 = vmax.f32 %v249_v23, 0.0 }
 0x14a   :  { %v305_v36 = vmax.f32 %v241_v32, 0.0 }
 0x14b   :  { %v327_v37 = vpack.c.bf16 %v307_v34, %v306_v33 }
 0x14c   :  { %v326_v38 = vpack.c.bf16 %v305_v36, %v304_v35  ;;  %v1132_v26 = vpop.f32.mrb[24].mxu0 }
 0x14d   :  { %v262_v39 = vadd.f32 %v1132_v26, %v1483_v11  ;;  %v253_v40 = vpop.f32.mrb[25].mxu0 }
 0x14e   :  { %v254_v41 = vadd.f32 %v1483_v11, %v253_v40  ;;  %v1133_v42 = vpop.f32.mrb[26].mxu0  ;;  %1174 = vmatprep.mubr.bf16.mxu1 %v326_v38 }
 0x14f   :  { %v265_v43 = vadd.f32 %v1133_v42, %v1483_v11  ;;  %v256_v44 = vpop.f32.mrb[27].mxu0  ;;  %1175 = vmatmul.mubr.bf16.gmra.mrb[20].mxu1 %v327_v37  ;;  %v310_v46 = vmax.f32 %v262_v39, 0.0 }
 0x150   :  { %v257_v45 = vadd.f32 %v1483_v11, %v256_v44  ;;  %v308_v48 = vmax.f32 %v254_v41, 0.0 }
 0x151   :  { %v311_v47 = vmax.f32 %v265_v43, 0.0 }
 0x152   :  { %v309_v49 = vmax.f32 %v257_v45, 0.0 }
 0x153   :  { %v329_v3 = vpack.c.bf16 %v311_v47, %v310_v46 }
 0x154   :  { %v328_v50 = vpack.c.bf16 %v309_v49, %v308_v48  ;;  %v1136_v51 = vpop.f32.mrb[28].mxu0 }
 0x155   :  { %v278_v52 = vadd.f32 %v1136_v51, %v1483_v11  ;;  %v269_v53 = vpop.f32.mrb[29].mxu0 }
 0x156   :  { %v270_v5 = vadd.f32 %v1483_v11, %v269_v53  ;;  %v1137_v54 = vpop.f32.mrb[30].mxu0  ;;  %1178 = vmatprep.mubr.bf16.mxu1 %v328_v50 }
 0x157   :  { %v281_v55 = vadd.f32 %v1137_v54, %v1483_v11  ;;  %v272_v56 = vpop.f32.mrb[31].mxu0  ;;  %1179 = vmatmul.mubr.bf16.gmra.mrb[24].mxu1 %v329_v3  ;;  %v314_v58 = vmax.f32 %v278_v52, 0.0 }
 0x158   :  { %v273_v57 = vadd.f32 %v1483_v11, %v272_v56  ;;  %v312_v60 = vmax.f32 %v270_v5, 0.0 }
 0x159   :  { %v315_v59 = vmax.f32 %v281_v55, 0.0 }
 0x15a   :  { %v313_v61 = vmax.f32 %v273_v57, 0.0 }
 0x15b   :  { %v331_v8 = vpack.c.bf16 %v315_v59, %v314_v58 }
 0x15c   :  { %v330_v62 = vpack.c.bf16 %v313_v61, %v312_v60 }
 0x15e   :  { %1182 = vmatprep.mubr.bf16.mxu1 %v330_v62 }
 0x15f   :  { %1183 = vmatmul.mubr.bf16.gmra.mrb[28].mxu1 %v331_v8 }
 0x1fa   :  { %v1156_v63 = vpop.f32.mrb[0].mxu1 }
 0x1fb   :  { %v375_v0 = vadd.f32 %v1156_v63, %v1483_v11  ;;  %v366_v1 = vpop.f32.mrb[1].mxu1 }
 0x1fc   :  { %v367_v14 = vadd.f32 %v1483_v11, %v366_v1  ;;  %v1157_v2 = vpop.f32.mrb[2].mxu1 }
 0x1fd   :  { %v378_v4 = vadd.f32 %v1157_v2, %v1483_v11  ;;  %v369_v6 = vpop.f32.mrb[3].mxu1  ;;  %v495_v9 = vmax.f32 %v375_v0, 0.0 }
 0x1fe   :  { %v370_v7 = vadd.f32 %v1483_v11, %v369_v6  ;;  %v493_v12 = vmax.f32 %v367_v14, 0.0 }
 0x1ff   :  { %v496_v10 = vmax.f32 %v378_v4, 0.0 }
 0x200   :  { %v494_v13 = vmax.f32 %v370_v7, 0.0 }
 0x201   :  { %v526_v17 = vpack.c.bf16 %v496_v10, %v495_v9 }
 0x202   :  { %v525_v15 = vpack.c.bf16 %v494_v13, %v493_v12  ;;  %v1160_v16 = vpop.f32.mrb[4].mxu1 }
 0x203   :  { %v391_v18 = vadd.f32 %v1160_v16, %v1483_v11  ;;  %v382_v19 = vpop.f32.mrb[5].mxu1 }
 0x204   :  { %v383_v20 = vadd.f32 %v1483_v11, %v382_v19  ;;  %v1161_v21 = vpop.f32.mrb[6].mxu1  ;;  %1202 = vmatprep.mubr.bf16.mxu0 %v525_v15 }
 0x205   :  { %v394_v22 = vadd.f32 %v1161_v21, %v1483_v11  ;;  %v385_v24 = vpop.f32.mrb[7].mxu1  ;;  %1203 = vmatmul.mubr.bf16.vlgmr.msra.gmra.mrb[32].mxu0 %v526_v17  ;;  %v499_v27 = vmax.f32 %v391_v18, 0.0 }
 0x206   :  { %v386_v25 = vadd.f32 %v1483_v11, %v385_v24  ;;  %v497_v29 = vmax.f32 %v383_v20, 0.0 }
 0x207   :  { %v500_v28 = vmax.f32 %v394_v22, 0.0 }
 0x208   :  { %v498_v30 = vmax.f32 %v386_v25, 0.0 }
 0x209   :  { %v528_v23 = vpack.c.bf16 %v500_v28, %v499_v27 }
 0x20a   :  { %v527_v31 = vpack.c.bf16 %v498_v30, %v497_v29  ;;  %v1164_v32 = vpop.f32.mrb[8].mxu1 }
 0x20b   :  { %v407_v33 = vadd.f32 %v1164_v32, %v1483_v11  ;;  %v398_v34 = vpop.f32.mrb[9].mxu1 }
 0x20c   :  { %v399_v35 = vadd.f32 %v1483_v11, %v398_v34  ;;  %v1165_v36 = vpop.f32.mrb[10].mxu1  ;;  %1206 = vmatprep.mubr.bf16.mxu0 %v527_v31 }
 0x20d   :  { %v410_v37 = vadd.f32 %v1165_v36, %v1483_v11  ;;  %v401_v38 = vpop.f32.mrb[11].mxu1  ;;  %1207 = vmatmul.mubr.bf16.gmra.mrb[36].mxu0 %v528_v23  ;;  %v503_v39 = vmax.f32 %v407_v33, 0.0 }
 0x20e   :  { %v402_v26 = vadd.f32 %v1483_v11, %v401_v38  ;;  %v501_v41 = vmax.f32 %v399_v35, 0.0 }
 0x20f   :  { %v504_v40 = vmax.f32 %v410_v37, 0.0 }
 0x210   :  { %v502_v42 = vmax.f32 %v402_v26, 0.0 }
 0x211   :  { %v530_v43 = vpack.c.bf16 %v504_v40, %v503_v39 }
 0x212   :  { %v529_v44 = vpack.c.bf16 %v502_v42, %v501_v41  ;;  %v1168_v45 = vpop.f32.mrb[12].mxu1 }
 0x213   :  { %v423_v46 = vadd.f32 %v1168_v45, %v1483_v11  ;;  %v414_v47 = vpop.f32.mrb[13].mxu1 }
 0x214   :  { %v415_v48 = vadd.f32 %v1483_v11, %v414_v47  ;;  %v1169_v49 = vpop.f32.mrb[14].mxu1  ;;  %1210 = vmatprep.mubr.bf16.mxu0 %v529_v44 }
 0x215   :  { %v426_v3 = vadd.f32 %v1169_v49, %v1483_v11  ;;  %v417_v50 = vpop.f32.mrb[15].mxu1  ;;  %1211 = vmatmul.mubr.bf16.gmra.mrb[40].mxu0 %v530_v43  ;;  %v507_v52 = vmax.f32 %v423_v46, 0.0 }
 0x216   :  { %v418_v51 = vadd.f32 %v1483_v11, %v417_v50  ;;  %v505_v5 = vmax.f32 %v415_v48, 0.0 }
 0x217   :  { %v508_v53 = vmax.f32 %v426_v3, 0.0 }
 0x218   :  { %v506_v54 = vmax.f32 %v418_v51, 0.0 }
 0x219   :  { %v532_v55 = vpack.c.bf16 %v508_v53, %v507_v52 }
 0x21a   :  { %v531_v56 = vpack.c.bf16 %v506_v54, %v505_v5  ;;  %v1172_v57 = vpop.f32.mrb[16].mxu1 }
 0x21b   :  { %v439_v58 = vadd.f32 %v1172_v57, %v1483_v11  ;;  %v430_v59 = vpop.f32.mrb[17].mxu1 }
 0x21c   :  { %v431_v60 = vadd.f32 %v1483_v11, %v430_v59  ;;  %v1173_v61 = vpop.f32.mrb[18].mxu1  ;;  %1214 = vmatprep.mubr.bf16.mxu0 %v531_v56 }
 0x21d   :  { %v442_v8 = vadd.f32 %v1173_v61, %v1483_v11  ;;  %v433_v62 = vpop.f32.mrb[19].mxu1  ;;  %1215 = vmatmul.mubr.bf16.gmra.mrb[44].mxu0 %v532_v55  ;;  %v511_v0 = vmax.f32 %v439_v58, 0.0 }
 0x21e   :  { %v434_v63 = vadd.f32 %v1483_v11, %v433_v62  ;;  %v509_v14 = vmax.f32 %v431_v60, 0.0 }
 0x21f   :  { %v512_v1 = vmax.f32 %v442_v8, 0.0 }
 0x220   :  { %v510_v2 = vmax.f32 %v434_v63, 0.0 }
 0x221   :  { %v534_v4 = vpack.c.bf16 %v512_v1, %v511_v0 }
 0x222   :  { %v533_v6 = vpack.c.bf16 %v510_v2, %v509_v14  ;;  %v1176_v7 = vpop.f32.mrb[20].mxu1 }
 0x223   :  { %v455_v9 = vadd.f32 %v1176_v7, %v1483_v11  ;;  %v446_v10 = vpop.f32.mrb[21].mxu1 }
 0x224   :  { %v447_v12 = vadd.f32 %v1483_v11, %v446_v10  ;;  %v1177_v13 = vpop.f32.mrb[22].mxu1  ;;  %1218 = vmatprep.mubr.bf16.mxu0 %v533_v6 }
 0x225   :  { %v458_v17 = vadd.f32 %v1177_v13, %v1483_v11  ;;  %v449_v15 = vpop.f32.mrb[23].mxu1  ;;  %1219 = vmatmul.mubr.bf16.gmra.mrb[48].mxu0 %v534_v4  ;;  %v515_v18 = vmax.f32 %v455_v9, 0.0 }
 0x226   :  { %v450_v16 = vadd.f32 %v1483_v11, %v449_v15  ;;  %v513_v20 = vmax.f32 %v447_v12, 0.0 }
 0x227   :  { %v516_v19 = vmax.f32 %v458_v17, 0.0 }
 0x228   :  { %v514_v21 = vmax.f32 %v450_v16, 0.0 }
 0x229   :  { %v536_v22 = vpack.c.bf16 %v516_v19, %v515_v18 }
 0x22a   :  { %v535_v24 = vpack.c.bf16 %v514_v21, %v513_v20  ;;  %v1180_v25 = vpop.f32.mrb[24].mxu1 }
 0x22b   :  { %v471_v27 = vadd.f32 %v1180_v25, %v1483_v11  ;;  %v462_v28 = vpop.f32.mrb[25].mxu1 }
 0x22c   :  { %v463_v29 = vadd.f32 %v1483_v11, %v462_v28  ;;  %v1181_v30 = vpop.f32.mrb[26].mxu1  ;;  %1222 = vmatprep.mubr.bf16.mxu0 %v535_v24 }
 0x22d   :  { %v474_v23 = vadd.f32 %v1181_v30, %v1483_v11  ;;  %v465_v31 = vpop.f32.mrb[27].mxu1  ;;  %1223 = vmatmul.mubr.bf16.gmra.mrb[52].mxu0 %v536_v22  ;;  %v519_v33 = vmax.f32 %v471_v27, 0.0 }
 0x22e   :  { %v466_v32 = vadd.f32 %v1483_v11, %v465_v31  ;;  %v517_v35 = vmax.f32 %v463_v29, 0.0 }
 0x22f   :  { %v520_v34 = vmax.f32 %v474_v23, 0.0 }
 0x230   :  { %v518_v36 = vmax.f32 %v466_v32, 0.0 }
 0x231   :  { %v538_v37 = vpack.c.bf16 %v520_v34, %v519_v33 }
 0x232   :  { %v537_v38 = vpack.c.bf16 %v518_v36, %v517_v35  ;;  %v1184_v26 = vpop.f32.mrb[28].mxu1 }
 0x233   :  { %v487_v39 = vadd.f32 %v1184_v26, %v1483_v11  ;;  %v478_v40 = vpop.f32.mrb[29].mxu1 }
 0x234   :  { %v479_v41 = vadd.f32 %v1483_v11, %v478_v40  ;;  %v1185_v42 = vpop.f32.mrb[30].mxu1  ;;  %1226 = vmatprep.mubr.bf16.mxu0 %v537_v38 }
 0x235   :  { %v490_v43 = vadd.f32 %v1185_v42, %v1483_v11  ;;  %v481_v44 = vpop.f32.mrb[31].mxu1  ;;  %1227 = vmatmul.mubr.bf16.gmra.mrb[56].mxu0 %v538_v37  ;;  %v523_v46 = vmax.f32 %v487_v39, 0.0 }
 0x236   :  { %v482_v45 = vadd.f32 %v1483_v11, %v481_v44  ;;  %v521_v48 = vmax.f32 %v479_v41, 0.0 }
 0x237   :  { %v524_v47 = vmax.f32 %v490_v43, 0.0 }
 0x238   :  { %v522_v49 = vmax.f32 %v482_v45, 0.0 }
 0x239   :  { %v540_v3 = vpack.c.bf16 %v524_v47, %v523_v46 }
 0x23a   :  { %v539_v50 = vpack.c.bf16 %v522_v49, %v521_v48 }
 0x23c   :  { %1230 = vmatprep.mubr.bf16.mxu0 %v539_v50 }
 0x23d   :  { %1231 = vmatmul.mubr.bf16.gmra.mrb[60].mxu0 %v540_v3 }
 0x2d8   :  { %v1204_v51 = vpop.f32.mrb[32].mxu0 }
 0x2d9   :  { %v584_v52 = vadd.f32 %v1204_v51, %v1483_v11  ;;  %v575_v53 = vpop.f32.mrb[33].mxu0 }
 0x2da   :  { %v576_v5 = vadd.f32 %v1483_v11, %v575_v53  ;;  %v1205_v54 = vpop.f32.mrb[34].mxu0 }
 0x2db   :  { %v587_v55 = vadd.f32 %v1205_v54, %v1483_v11  ;;  %v578_v56 = vpop.f32.mrb[35].mxu0  ;;  %v704_v58 = vmax.f32 %v584_v52, 0.0 }
 0x2dc   :  { %v579_v57 = vadd.f32 %v1483_v11, %v578_v56  ;;  %v702_v60 = vmax.f32 %v576_v5, 0.0 }
 0x2dd   :  { %v705_v59 = vmax.f32 %v587_v55, 0.0 }
 0x2de   :  { %v703_v61 = vmax.f32 %v579_v57, 0.0 }
 0x2df   :  { %v735_v8 = vpack.c.bf16 %v705_v59, %v704_v58 }
 0x2e0   :  { %v734_v62 = vpack.c.bf16 %v703_v61, %v702_v60  ;;  %v1208_v63 = vpop.f32.mrb[36].mxu0 }
 0x2e1   :  { %v600_v0 = vadd.f32 %v1208_v63, %v1483_v11  ;;  %v591_v1 = vpop.f32.mrb[37].mxu0 }
 0x2e2   :  { %v592_v14 = vadd.f32 %v1483_v11, %v591_v1  ;;  %v1209_v2 = vpop.f32.mrb[38].mxu0  ;;  %1250 = vmatprep.mubr.bf16.mxu1 %v734_v62 }
 0x2e3   :  { %v603_v4 = vadd.f32 %v1209_v2, %v1483_v11  ;;  %v594_v6 = vpop.f32.mrb[39].mxu0  ;;  %1251 = vmatmul.mubr.bf16.vlgmr.msra.gmra.mrb[32].mxu1 %v735_v8  ;;  %v708_v9 = vmax.f32 %v600_v0, 0.0 }
 0x2e4   :  { %v595_v7 = vadd.f32 %v1483_v11, %v594_v6  ;;  %v706_v12 = vmax.f32 %v592_v14, 0.0 }
 0x2e5   :  { %v709_v10 = vmax.f32 %v603_v4, 0.0 }
 0x2e6   :  { %v707_v13 = vmax.f32 %v595_v7, 0.0 }
 0x2e7   :  { %v737_v17 = vpack.c.bf16 %v709_v10, %v708_v9 }
 0x2e8   :  { %v736_v15 = vpack.c.bf16 %v707_v13, %v706_v12  ;;  %v1212_v16 = vpop.f32.mrb[40].mxu0 }
 0x2e9   :  { %v616_v18 = vadd.f32 %v1212_v16, %v1483_v11  ;;  %v607_v19 = vpop.f32.mrb[41].mxu0 }
 0x2ea   :  { %v608_v20 = vadd.f32 %v1483_v11, %v607_v19  ;;  %v1213_v21 = vpop.f32.mrb[42].mxu0  ;;  %1254 = vmatprep.mubr.bf16.mxu1 %v736_v15 }
 0x2eb   :  { %v619_v22 = vadd.f32 %v1213_v21, %v1483_v11  ;;  %v610_v24 = vpop.f32.mrb[43].mxu0  ;;  %1255 = vmatmul.mubr.bf16.gmra.mrb[36].mxu1 %v737_v17  ;;  %v712_v27 = vmax.f32 %v616_v18, 0.0 }
 0x2ec   :  { %v611_v25 = vadd.f32 %v1483_v11, %v610_v24  ;;  %v710_v29 = vmax.f32 %v608_v20, 0.0 }
 0x2ed   :  { %v713_v28 = vmax.f32 %v619_v22, 0.0 }
 0x2ee   :  { %v711_v30 = vmax.f32 %v611_v25, 0.0 }
 0x2ef   :  { %v739_v23 = vpack.c.bf16 %v713_v28, %v712_v27 }
 0x2f0   :  { %v738_v31 = vpack.c.bf16 %v711_v30, %v710_v29  ;;  %v1216_v32 = vpop.f32.mrb[44].mxu0 }
 0x2f1   :  { %v632_v33 = vadd.f32 %v1216_v32, %v1483_v11  ;;  %v623_v34 = vpop.f32.mrb[45].mxu0 }
 0x2f2   :  { %v624_v35 = vadd.f32 %v1483_v11, %v623_v34  ;;  %v1217_v36 = vpop.f32.mrb[46].mxu0  ;;  %1258 = vmatprep.mubr.bf16.mxu1 %v738_v31 }
 0x2f3   :  { %v635_v37 = vadd.f32 %v1217_v36, %v1483_v11  ;;  %v626_v38 = vpop.f32.mrb[47].mxu0  ;;  %1259 = vmatmul.mubr.bf16.gmra.mrb[40].mxu1 %v739_v23  ;;  %v716_v39 = vmax.f32 %v632_v33, 0.0 }
 0x2f4   :  { %v627_v26 = vadd.f32 %v1483_v11, %v626_v38  ;;  %v714_v41 = vmax.f32 %v624_v35, 0.0 }
 0x2f5   :  { %v717_v40 = vmax.f32 %v635_v37, 0.0 }
 0x2f6   :  { %v715_v42 = vmax.f32 %v627_v26, 0.0 }
 0x2f7   :  { %v741_v43 = vpack.c.bf16 %v717_v40, %v716_v39 }
 0x2f8   :  { %v740_v44 = vpack.c.bf16 %v715_v42, %v714_v41  ;;  %v1220_v45 = vpop.f32.mrb[48].mxu0 }
 0x2f9   :  { %v648_v46 = vadd.f32 %v1220_v45, %v1483_v11  ;;  %v639_v47 = vpop.f32.mrb[49].mxu0 }
 0x2fa   :  { %v640_v48 = vadd.f32 %v1483_v11, %v639_v47  ;;  %v1221_v49 = vpop.f32.mrb[50].mxu0  ;;  %1262 = vmatprep.mubr.bf16.mxu1 %v740_v44 }
 0x2fb   :  { %v651_v3 = vadd.f32 %v1221_v49, %v1483_v11  ;;  %v642_v50 = vpop.f32.mrb[51].mxu0  ;;  %1263 = vmatmul.mubr.bf16.gmra.mrb[44].mxu1 %v741_v43  ;;  %v720_v52 = vmax.f32 %v648_v46, 0.0 }
 0x2fc   :  { %v643_v51 = vadd.f32 %v1483_v11, %v642_v50  ;;  %v718_v5 = vmax.f32 %v640_v48, 0.0 }
 0x2fd   :  { %v721_v53 = vmax.f32 %v651_v3, 0.0 }
 0x2fe   :  { %v719_v54 = vmax.f32 %v643_v51, 0.0 }
 0x2ff   :  { %v743_v55 = vpack.c.bf16 %v721_v53, %v720_v52 }
 0x300   :  { %v742_v56 = vpack.c.bf16 %v719_v54, %v718_v5  ;;  %v1224_v57 = vpop.f32.mrb[52].mxu0 }
 0x301   :  { %v664_v58 = vadd.f32 %v1224_v57, %v1483_v11  ;;  %v655_v59 = vpop.f32.mrb[53].mxu0 }
 0x302   :  { %v656_v60 = vadd.f32 %v1483_v11, %v655_v59  ;;  %v1225_v61 = vpop.f32.mrb[54].mxu0  ;;  %1266 = vmatprep.mubr.bf16.mxu1 %v742_v56 }
 0x303   :  { %v667_v8 = vadd.f32 %v1225_v61, %v1483_v11  ;;  %v658_v62 = vpop.f32.mrb[55].mxu0  ;;  %1267 = vmatmul.mubr.bf16.gmra.mrb[48].mxu1 %v743_v55  ;;  %v724_v0 = vmax.f32 %v664_v58, 0.0 }
 0x304   :  { %v659_v63 = vadd.f32 %v1483_v11, %v658_v62  ;;  %v722_v14 = vmax.f32 %v656_v60, 0.0 }
 0x305   :  { %v725_v1 = vmax.f32 %v667_v8, 0.0 }
 0x306   :  { %v723_v2 = vmax.f32 %v659_v63, 0.0 }
 0x307   :  { %v745_v4 = vpack.c.bf16 %v725_v1, %v724_v0 }
 0x308   :  { %v744_v6 = vpack.c.bf16 %v723_v2, %v722_v14  ;;  %v1228_v7 = vpop.f32.mrb[56].mxu0 }
 0x309   :  { %v680_v9 = vadd.f32 %v1228_v7, %v1483_v11  ;;  %v671_v10 = vpop.f32.mrb[57].mxu0 }
 0x30a   :  { %v672_v12 = vadd.f32 %v1483_v11, %v671_v10  ;;  %v1229_v13 = vpop.f32.mrb[58].mxu0  ;;  %1270 = vmatprep.mubr.bf16.mxu1 %v744_v6 }
 0x30b   :  { %v683_v17 = vadd.f32 %v1229_v13, %v1483_v11  ;;  %v674_v15 = vpop.f32.mrb[59].mxu0  ;;  %1271 = vmatmul.mubr.bf16.gmra.mrb[52].mxu1 %v745_v4  ;;  %v728_v18 = vmax.f32 %v680_v9, 0.0 }
 0x30c   :  { %v675_v16 = vadd.f32 %v1483_v11, %v674_v15  ;;  %v726_v20 = vmax.f32 %v672_v12, 0.0 }
 0x30d   :  { %v729_v19 = vmax.f32 %v683_v17, 0.0 }
 0x30e   :  { %v727_v21 = vmax.f32 %v675_v16, 0.0 }
 0x30f   :  { %v747_v22 = vpack.c.bf16 %v729_v19, %v728_v18 }
 0x310   :  { %v746_v24 = vpack.c.bf16 %v727_v21, %v726_v20  ;;  %v1232_v25 = vpop.f32.mrb[60].mxu0 }
 0x311   :  { %v696_v27 = vadd.f32 %v1232_v25, %v1483_v11  ;;  %v687_v28 = vpop.f32.mrb[61].mxu0 }
 0x312   :  { %v688_v29 = vadd.f32 %v1483_v11, %v687_v28  ;;  %v1233_v30 = vpop.f32.mrb[62].mxu0  ;;  %1274 = vmatprep.mubr.bf16.mxu1 %v746_v24 }
 0x313   :  { %v699_v23 = vadd.f32 %v1233_v30, %v1483_v11  ;;  %v690_v31 = vpop.f32.mrb[63].mxu0  ;;  %1275 = vmatmul.mubr.bf16.gmra.mrb[56].mxu1 %v747_v22  ;;  %v732_v33 = vmax.f32 %v696_v27, 0.0 }
 0x314   :  { %v691_v32 = vadd.f32 %v1483_v11, %v690_v31  ;;  %v730_v35 = vmax.f32 %v688_v29, 0.0 }
 0x315   :  { %v733_v34 = vmax.f32 %v699_v23, 0.0 }
 0x316   :  { %v731_v36 = vmax.f32 %v691_v32, 0.0 }
 0x317   :  { %v749_v37 = vpack.c.bf16 %v733_v34, %v732_v33 }
 0x318   :  { %v748_v38 = vpack.c.bf16 %v731_v36, %v730_v35 }
 0x31a   :  { %1278 = vmatprep.mubr.bf16.mxu1 %v748_v38 }
 0x31b   :  { %1279 = vmatmul.mubr.bf16.gmra.mrb[60].mxu1 %v749_v37 }
 0x3b6   :  { %v1252_v26 = vpop.f32.mrb[32].mxu1 }
 0x3b7   :  { %v793_v39 = vadd.f32 %v1252_v26, %v1483_v11  ;;  %v784_v40 = vpop.f32.mrb[33].mxu1 }
 0x3b8   :  { %v785_v41 = vadd.f32 %v1483_v11, %v784_v40  ;;  %v1253_v42 = vpop.f32.mrb[34].mxu1 }
 0x3b9   :  { %v913_v43 = vmax.f32 %v793_v39, 0.0  ;;  %v796_v44 = vadd.f32 %v1253_v42, %v1483_v11  ;;  %v787_v45 = vpop.f32.mrb[35].mxu1 }
 0x3ba   :  { %v911_v46 = vmax.f32 %v785_v41, 0.0  ;;  %v788_v47 = vadd.f32 %v1483_v11, %v787_v45 }
 0x3bb   :  { %945 = vst [vmem:[#allocation7 + $0x10] sm:$0xff] %v913_v43  ;;  %v914_v48 = vmax.f32 %v796_v44, 0.0 }
 0x3bc   :  { %943 = vst [vmem:[#allocation7] sm:$0xff] %v911_v46  ;;  %v912_v49 = vmax.f32 %v788_v47, 0.0 }
 0x3bd   :  { %946 = vst [vmem:[#allocation7 + $0x18] sm:$0xff] %v914_v48 }
 0x3be   :  { %944 = vst [vmem:[#allocation7 + $0x8] sm:$0xff] %v912_v49  ;;  %v1256_v3 = vpop.f32.mrb[36].mxu1 }
 0x3bf   :  { %v809_v50 = vadd.f32 %v1256_v3, %v1483_v11  ;;  %v800_v51 = vpop.f32.mrb[37].mxu1 }
 0x3c0   :  { %v801_v52 = vadd.f32 %v1483_v11, %v800_v51  ;;  %v1257_v53 = vpop.f32.mrb[38].mxu1 }
 0x3c1   :  { %v917_v5 = vmax.f32 %v809_v50, 0.0  ;;  %v812_v54 = vadd.f32 %v1257_v53, %v1483_v11  ;;  %v803_v55 = vpop.f32.mrb[39].mxu1 }
 0x3c2   :  { %v915_v56 = vmax.f32 %v801_v52, 0.0  ;;  %v804_v57 = vadd.f32 %v1483_v11, %v803_v55 }
 0x3c3   :  { %949 = vst [vmem:[#allocation7 + $0x30] sm:$0xff] %v917_v5  ;;  %v918_v58 = vmax.f32 %v812_v54, 0.0 }
 0x3c4   :  { %947 = vst [vmem:[#allocation7 + $0x20] sm:$0xff] %v915_v56  ;;  %v916_v59 = vmax.f32 %v804_v57, 0.0 }
 0x3c5   :  { %950 = vst [vmem:[#allocation7 + $0x38] sm:$0xff] %v918_v58  ;;  %v1287_v58 = vld [vmem:[%s1644_s2] ss:$0 sm:$0xff] }
 0x3c6   :  { %948 = vst [vmem:[#allocation7 + $0x28] sm:$0xff] %v916_v59  ;;  %v1260_v60 = vpop.f32.mrb[40].mxu1 }
 0x3c7   :  { %v825_v61 = vadd.f32 %v1260_v60, %v1483_v11  ;;  %v816_v8 = vpop.f32.mrb[41].mxu1 }
 0x3c8   :  { %v817_v62 = vadd.f32 %v1483_v11, %v816_v8  ;;  %v1261_v63 = vpop.f32.mrb[42].mxu1 }
 0x3c9   :  { %v921_v0 = vmax.f32 %v825_v61, 0.0  ;;  %v828_v1 = vadd.f32 %v1261_v63, %v1483_v11  ;;  %v819_v14 = vpop.f32.mrb[43].mxu1 }
 0x3ca   :  { %v919_v2 = vmax.f32 %v817_v62, 0.0  ;;  %v820_v4 = vadd.f32 %v1483_v11, %v819_v14 }
 0x3cb   :  { %953 = vst [vmem:[#allocation7 + $0x50] sm:$0xff] %v921_v0  ;;  %v922_v6 = vmax.f32 %v828_v1, 0.0 }
 0x3cc   :  { %951 = vst [vmem:[#allocation7 + $0x40] sm:$0xff] %v919_v2  ;;  %v920_v7 = vmax.f32 %v820_v4, 0.0 }
 0x3cd   :  { %954 = vst [vmem:[#allocation7 + $0x58] sm:$0xff] %v922_v6 }
 0x3ce   :  { %952 = vst [vmem:[#allocation7 + $0x48] sm:$0xff] %v920_v7  ;;  %v1264_v9 = vpop.f32.mrb[44].mxu1 }
 0x3cf   :  { %v841_v10 = vadd.f32 %v1264_v9, %v1483_v11  ;;  %v832_v12 = vpop.f32.mrb[45].mxu1 }
 0x3d0   :  { %v833_v13 = vadd.f32 %v1483_v11, %v832_v12  ;;  %v1265_v17 = vpop.f32.mrb[46].mxu1 }
 0x3d1   :  { %v925_v15 = vmax.f32 %v841_v10, 0.0  ;;  %v844_v16 = vadd.f32 %v1265_v17, %v1483_v11  ;;  %v835_v18 = vpop.f32.mrb[47].mxu1 }
 0x3d2   :  { %v923_v19 = vmax.f32 %v833_v13, 0.0  ;;  %v836_v20 = vadd.f32 %v1483_v11, %v835_v18 }
 0x3d3   :  { %957 = vst [vmem:[#allocation7 + $0x70] sm:$0xff] %v925_v15  ;;  %v926_v21 = vmax.f32 %v844_v16, 0.0 }
 0x3d4   :  { %955 = vst [vmem:[#allocation7 + $0x60] sm:$0xff] %v923_v19  ;;  %v924_v22 = vmax.f32 %v836_v20, 0.0 }
 0x3d5   :  { %958 = vst [vmem:[#allocation7 + $0x78] sm:$0xff] %v926_v21 }
 0x3d6   :  { %956 = vst [vmem:[#allocation7 + $0x68] sm:$0xff] %v924_v22  ;;  %v1268_v24 = vpop.f32.mrb[48].mxu1 }
 0x3d7   :  { %v857_v25 = vadd.f32 %v1268_v24, %v1483_v11  ;;  %v848_v27 = vpop.f32.mrb[49].mxu1 }
 0x3d8   :  { %v849_v28 = vadd.f32 %v1483_v11, %v848_v27  ;;  %v1269_v29 = vpop.f32.mrb[50].mxu1 }
 0x3d9   :  { %v929_v30 = vmax.f32 %v857_v25, 0.0  ;;  %v860_v23 = vadd.f32 %v1269_v29, %v1483_v11  ;;  %v851_v31 = vpop.f32.mrb[51].mxu1 }
 0x3da   :  { %v927_v32 = vmax.f32 %v849_v28, 0.0  ;;  %v852_v33 = vadd.f32 %v1483_v11, %v851_v31 }
 0x3db   :  { %961 = vst [vmem:[#allocation7 + $0x90] sm:$0xff] %v929_v30  ;;  %v930_v34 = vmax.f32 %v860_v23, 0.0 }
 0x3dc   :  { %959 = vst [vmem:[#allocation7 + $0x80] sm:$0xff] %v927_v32  ;;  %v928_v35 = vmax.f32 %v852_v33, 0.0 }
 0x3dd   :  { %962 = vst [vmem:[#allocation7 + $0x98] sm:$0xff] %v930_v34 }
 0x3de   :  { %960 = vst [vmem:[#allocation7 + $0x88] sm:$0xff] %v928_v35  ;;  %v1272_v36 = vpop.f32.mrb[52].mxu1 }
 0x3df   :  { %v873_v37 = vadd.f32 %v1272_v36, %v1483_v11  ;;  %v864_v38 = vpop.f32.mrb[53].mxu1 }
 0x3e0   :  { %v865_v26 = vadd.f32 %v1483_v11, %v864_v38  ;;  %v1273_v39 = vpop.f32.mrb[54].mxu1 }
 0x3e1   :  { %v933_v40 = vmax.f32 %v873_v37, 0.0  ;;  %v876_v41 = vadd.f32 %v1273_v39, %v1483_v11  ;;  %v867_v42 = vpop.f32.mrb[55].mxu1 }
 0x3e2   :  { %v931_v43 = vmax.f32 %v865_v26, 0.0  ;;  %v868_v44 = vadd.f32 %v1483_v11, %v867_v42 }
 0x3e3   :  { %965 = vst [vmem:[#allocation7 + $0xb0] sm:$0xff] %v933_v40  ;;  %v934_v45 = vmax.f32 %v876_v41, 0.0 }
 0x3e4   :  { %963 = vst [vmem:[#allocation7 + $0xa0] sm:$0xff] %v931_v43  ;;  %v932_v46 = vmax.f32 %v868_v44, 0.0 }
 0x3e5   :  { %966 = vst [vmem:[#allocation7 + $0xb8] sm:$0xff] %v934_v45 }
 0x3e6   :  { %964 = vst [vmem:[#allocation7 + $0xa8] sm:$0xff] %v932_v46  ;;  %v1276_v47 = vpop.f32.mrb[56].mxu1 }
 0x3e7   :  { %v889_v48 = vadd.f32 %v1276_v47, %v1483_v11  ;;  %v880_v49 = vpop.f32.mrb[57].mxu1 }
 0x3e8   :  { %v881_v3 = vadd.f32 %v1483_v11, %v880_v49  ;;  %v1277_v50 = vpop.f32.mrb[58].mxu1 }
 0x3e9   :  { %v937_v51 = vmax.f32 %v889_v48, 0.0  ;;  %v892_v52 = vadd.f32 %v1277_v50, %v1483_v11  ;;  %v883_v53 = vpop.f32.mrb[59].mxu1 }
 0x3ea   :  { %v935_v5 = vmax.f32 %v881_v3, 0.0  ;;  %v884_v54 = vadd.f32 %v1483_v11, %v883_v53 }
 0x3eb   :  { %969 = vst [vmem:[#allocation7 + $0xd0] sm:$0xff] %v937_v51  ;;  %v938_v55 = vmax.f32 %v892_v52, 0.0 }
 0x3ec   :  { %967 = vst [vmem:[#allocation7 + $0xc0] sm:$0xff] %v935_v5  ;;  %v936_v56 = vmax.f32 %v884_v54, 0.0 }
 0x3ed   :  { %970 = vst [vmem:[#allocation7 + $0xd8] sm:$0xff] %v938_v55 }
 0x3ee   :  { %968 = vst [vmem:[#allocation7 + $0xc8] sm:$0xff] %v936_v56  ;;  %v1280_v57 = vpop.f32.mrb[60].mxu1 }
 0x3ef   :  { %v905_v59 = vadd.f32 %v1287_v58, %v1280_v57  ;;  %v896_v60 = vpop.f32.mrb[61].mxu1 }
 0x3f0   :  { %v897_v61 = vadd.f32 %v1287_v58, %v896_v60  ;;  %v1281_v8 = vpop.f32.mrb[62].mxu1 }
 0x3f1   :  { %v941_v62 = vmax.f32 %v905_v59, 0.0  ;;  %v908_v63 = vadd.f32 %v1287_v58, %v1281_v8  ;;  %v899_v0 = vpop.f32.mrb[63].mxu1 }
 0x3f2   :  { %v939_v11 = vmax.f32 %v897_v61, 0.0  ;;  %v900_v1 = vadd.f32 %v1287_v58, %v899_v0 }
 0x3f3   :  { %973 = vst [vmem:[#allocation7 + $0xf0] sm:$0xff] %v941_v62  ;;  %v942_v14 = vmax.f32 %v908_v63, 0.0 }
 0x3f4   :  { %971 = vst [vmem:[#allocation7 + $0xe0] sm:$0xff] %v939_v11  ;;  %v940_v2 = vmax.f32 %v900_v1, 0.0 }
 0x3f5   :  { %974 = vst [vmem:[#allocation7 + $0xf8] sm:$0xff] %v942_v14 }
 0x3f6   :  { %972 = vst [vmem:[#allocation7 + $0xe8] sm:$0xff] %v940_v2 }
 0x3f7   :  { %1343 = shalt.err (!%p1340_p6)
}
 0x3f8   :  { %s1344_s17 = scalar_lea.hbm %s1645_s3, 4096 }
 0x3f9   :  { %p1345_p7 = scmp.ne.s32.totalorder %s1645_s3, %s1344_s17  ;;  %p1348_p8 = scmp.lt.u32.totalorder %s1344_s17, %s1645_s3 }
 0x3fb   :  { %p1350_p9 = pnand %p1348_p8, %p1345_p7 }
 0x3fd   :  { %1353 = shalt.err (!%p1350_p9)
}
 0x3fe   :  { %986 = dma.vmem_to_hbm [thread:$0]  %s981_s14, 4096, %s1645_s3, [#allocation4], %s1361_s22, %s1361_s22, %s1362_s23  }
 0x3ff   :  { %1358 = dma.done.wait [#allocation4], 4096  }
 0x400   :  { %1359 = vsyncadd [#allocation4], 4294963200 }
 0x401   :  { %990 = vsyncpa [#allocation3], 1 }
 0x402   :  { %991 = vsyncpa [#allocation6], 1 }
 0x403   :  { %992 = vsyncpa [#allocation4], 1 }

</bundles_post_ra>
